<compile_context>
chip_gen: v6e
topology: v6e:2x2x1
jax: 0.10.0
libtpu: 0.0.40
codegen_flags: <defaults>
</compile_context>

<pallas_src>
import functools

import jax
import jax.numpy as jnp
from jax.experimental import pallas as pl
from jax.experimental.pallas import tpu as pltpu

LANE = 128
# Keep the whole (n_pad, F) XW slab VMEM-resident (constant index_map) only if
# its double-buffered footprint fits comfortably next to the A_hat tiles and
# accumulator on the smallest-VMEM target (v7x: 64 MiB physical / 32 MiB
# default scoped). Otherwise stream (tk, F) slabs per reduction step.
RESIDENT_XW_BUDGET = 24 * 1024 * 1024
VMEM_LIMIT_BYTES = 48 * 1024 * 1024  # < v7x 64 MiB physical; ample on v5e/v6e


def _rup(x, m):
    return ((x + m - 1) // m) * m


def _choose_tiles(n):
    """Pick (n_pad, tm, tk) for the aggregation kernels.

    tm: 256 preferred (amortizes per-step overhead, feeds 256-wide MXU on
        v6e/v7x), 128 for small graphs.  n_pad is rounded so there are always
        >= 2 row tiles (so v7x's two TensorCores both get work).
    tk: large (<= 2048) so reduction steps are few; per-step A_hat DMA stays
        ~<=1 MiB at bf16.
    """
    n_pad = _rup(max(n, 1), LANE)
    tm = 256 if n_pad >= 512 else 128
    n_pad = _rup(n_pad, 2 * tm)          # >= 2 row tiles
    tk = min(2048, n_pad)
    n_pad = _rup(n_pad, tk)              # tk divides n_pad (tm divides tk)
    return n_pad, tm, tk


# ----------------------------------------------------------------------------
# Pallas kernels
# ----------------------------------------------------------------------------
def _feat_kernel(x_ref, w_ref, o_ref):
    """o = X @ W (bf16 operands, f32 accumulation), tiled over node rows."""
    o_ref[...] = jnp.dot(
        x_ref[...], w_ref[...], preferred_element_type=jnp.float32
    ).astype(o_ref.dtype)


def _accumulate(adj_ref, xw_ref, b_ref, acc_ref, *, tk, xw_resident):
    """acc (+)= A_hat_tile @ XW_slab, bias fused into the k==0 write."""
    k = pl.program_id(1)
    if xw_resident:
        start = pl.multiple_of(k * tk, tk)
        xw = xw_ref[pl.ds(start, tk), :]
    else:
        xw = xw_ref[...]
    part = jnp.dot(adj_ref[...], xw, preferred_element_type=jnp.float32)

    @pl.when(k == 0)
    def _():
        acc_ref[...] = part + b_ref[...]     # no zero-init pass; bias fused

    @pl.when(k > 0)
    def _():
        acc_ref[...] += part


def _agg_relu_w2_kernel(adj_ref, xw_ref, b_ref, w2_ref, o_ref, acc_ref, *,
                        tk, xw_resident):
    """o = relu(A_hat @ XW + b) @ W2   (layer-2 transform fused in epilogue)."""
    _accumulate(adj_ref, xw_ref, b_ref, acc_ref, tk=tk, xw_resident=xw_resident)

    @pl.when(pl.program_id(1) == pl.num_programs(1) - 1)
    def _():
        h = jnp.maximum(acc_ref[...], 0.0)
        o_ref[...] = jnp.dot(
            h.astype(w2_ref.dtype), w2_ref[...],
            preferred_element_type=jnp.float32).astype(o_ref.dtype)


def _agg_logsoftmax_kernel(adj_ref, xw_ref, b_ref, o_ref, acc_ref, *,
                           tk, xw_resident, valid_cols):
    """o = log_softmax(A_hat @ XW + b) over the first `valid_cols` lanes."""
    _accumulate(adj_ref, xw_ref, b_ref, acc_ref, tk=tk, xw_resident=xw_resident)

    @pl.when(pl.program_id(1) == pl.num_programs(1) - 1)
    def _():
        z = acc_ref[...]
        lane = jax.lax.broadcasted_iota(jnp.int32, z.shape, 1)
        valid = lane < valid_cols
        zm = jnp.where(valid, z, -1e30)
        m = jnp.max(zm, axis=1, keepdims=True)
        s = zm - m
        e = jnp.where(valid, jnp.exp(s), 0.0)
        lse = jnp.log(jnp.sum(e, axis=1, keepdims=True))
        o_ref[...] = (s - lse).astype(o_ref.dtype)


# ----------------------------------------------------------------------------
# pallas_call wrappers
# ----------------------------------------------------------------------------
def feat_transform(x, w, *, tm, out_dtype=jnp.bfloat16):
    n, k = x.shape
    f = w.shape[1]
    return pl.pallas_call(
        _feat_kernel,
        out_shape=jax.ShapeDtypeStruct((n, f), out_dtype),
        grid_spec=pltpu.PrefetchScalarGridSpec(
            num_scalar_prefetch=0,
            grid=(n // tm,),
            in_specs=[
                pl.BlockSpec((tm, k), lambda i: (i, 0)),
                pl.BlockSpec((k, f), lambda i: (0, 0)),
            ],
            out_specs=pl.BlockSpec((tm, f), lambda i: (i, 0)),
        ),
        compiler_params=pltpu.CompilerParams(
            dimension_semantics=("parallel",),
            vmem_limit_bytes=VMEM_LIMIT_BYTES),
        cost_estimate=pl.CostEstimate(
            flops=2 * n * k * f, transcendentals=0,
            bytes_accessed=n * k * 2 + k * f * 2 + n * f * 2),
    )(x, w)


def _xw_spec(n, tk, f, resident):
    if resident:
        return pl.BlockSpec((n, f), lambda i, k: (0, 0))     # DMA'd once
    return pl.BlockSpec((tk, f), lambda i, k: (k, 0))         # streamed slabs


def gcn_agg_relu_w2(adj, xw, b, w2, *, tm, tk, out_dtype=jnp.bfloat16):
    n = adj.shape[0]
    f = xw.shape[1]
    c = w2.shape[1]
    resident = 2 * n * f * xw.dtype.itemsize <= RESIDENT_XW_BUDGET
    kernel = functools.partial(_agg_relu_w2_kernel, tk=tk, xw_resident=resident)
    xw_bytes = (n * f if resident else (n // tm) * n * f) * 2
    return pl.pallas_call(
        kernel,
        out_shape=jax.ShapeDtypeStruct((n, c), out_dtype),
        grid_spec=pltpu.PrefetchScalarGridSpec(
            num_scalar_prefetch=0,
            grid=(n // tm, n // tk),
            in_specs=[
                pl.BlockSpec((tm, tk), lambda i, k: (i, k)),   # A_hat tile
                _xw_spec(n, tk, f, resident),                  # XW (resident/streamed)
                pl.BlockSpec((1, f), lambda i, k: (0, 0)),     # layer-1 bias
                pl.BlockSpec((f, c), lambda i, k: (0, 0)),     # W2 (constant)
            ],
            out_specs=pl.BlockSpec((tm, c), lambda i, k: (i, 0)),
            scratch_shapes=[pltpu.VMEM((tm, f), jnp.float32)],
        ),
        compiler_params=pltpu.CompilerParams(
            dimension_semantics=("parallel", "arbitrary"),
            vmem_limit_bytes=VMEM_LIMIT_BYTES),
        cost_estimate=pl.CostEstimate(
            flops=2 * n * n * f + 2 * n * f * c,
            transcendentals=0,
            bytes_accessed=n * n * 2 + xw_bytes + f * 4 + f * c * 2 + n * c * 2),
    )(adj, xw, b, w2)


def gcn_agg_logsoftmax(adj, xw, b, *, tm, tk, valid_cols, out_dtype=jnp.float32):
    n = adj.shape[0]
    c = xw.shape[1]
    resident = 2 * n * c * xw.dtype.itemsize <= RESIDENT_XW_BUDGET
    kernel = functools.partial(_agg_logsoftmax_kernel, tk=tk,
                               xw_resident=resident, valid_cols=valid_cols)
    xw_bytes = (n * c if resident else (n // tm) * n * c) * 2
    return pl.pallas_call(
        kernel,
        out_shape=jax.ShapeDtypeStruct((n, c), out_dtype),
        grid_spec=pltpu.PrefetchScalarGridSpec(
            num_scalar_prefetch=0,
            grid=(n // tm, n // tk),
            in_specs=[
                pl.BlockSpec((tm, tk), lambda i, k: (i, k)),   # A_hat tile
                _xw_spec(n, tk, c, resident),                  # HW2
                pl.BlockSpec((1, c), lambda i, k: (0, 0)),     # layer-2 bias
            ],
            out_specs=pl.BlockSpec((tm, c), lambda i, k: (i, 0)),
            scratch_shapes=[pltpu.VMEM((tm, c), jnp.float32)],
        ),
        compiler_params=pltpu.CompilerParams(
            dimension_semantics=("parallel", "arbitrary"),
            vmem_limit_bytes=VMEM_LIMIT_BYTES),
        cost_estimate=pl.CostEstimate(
            flops=2 * n * n * c,
            transcendentals=n * c,
            bytes_accessed=n * n * 2 + xw_bytes + c * 4 + n * c * 4),
    )(adj, xw, b)


# ----------------------------------------------------------------------------
# Glue: normalized adjacency, params, forward
# ----------------------------------------------------------------------------
def normalized_adjacency_padded(edge_index, num_nodes, n_pad, dtype=jnp.float32):
    """Dense D^{-1/2}(A+I)D^{-1/2} built directly at padded size, single cast.

    Padded rows/cols are exactly zero (no self-loop, zero degree), so they
    contribute nothing to the aggregations.
    """
    src, dst = edge_index[0], edge_index[1]
    adj = jnp.zeros((n_pad, n_pad), jnp.float32)
    adj = adj.at[dst, src].add(1.0)                      # message flows src -> dst
    idx = jnp.arange(n_pad)
    adj = adj.at[idx, idx].add((idx < num_nodes).astype(jnp.float32))  # self loops
    deg = jnp.sum(adj, axis=1)
    dinv = jnp.where(deg > 0, jax.lax.rsqrt(deg), 0.0)
    return (adj * dinv[:, None] * dinv[None, :]).astype(dtype)


def glorot(key, shape):
    fan_in, fan_out = shape
    limit = jnp.sqrt(6.0 / (fan_in + fan_out))
    return jax.random.uniform(key, shape, jnp.float32, -limit, limit)


def init_params(key, in1, in2, hidden, out_channels):
    k = jax.random.split(key, 3)
    return {
        "w1a": glorot(k[0], (in1, hidden)),
        "b1a": jnp.zeros((1, hidden), jnp.float32),
        "w1b": glorot(k[1], (in2, hidden)),
        "b1b": jnp.zeros((1, hidden), jnp.float32),
        "w2": glorot(k[2], (2 * hidden, out_channels)),
        "b2": jnp.zeros((1, out_channels), jnp.float32),
    }


def gcnmd_forward(params, x_mod1, x_mod2, edge_index):
    n, f1 = x_mod1.shape
    f2 = x_mod2.shape[1]
    hidden = params["w1a"].shape[1]
    out_channels = params["w2"].shape[1]

    n_pad, tm, tk = _choose_tiles(n)
    f1_pad = _rup(f1, LANE)
    f2_pad = _rup(f2, LANE)
    h_pad = _rup(hidden, LANE)
    c_pad = _rup(out_channels, LANE)

    # Normalized adjacency, built at padded size, cast once to bf16 (dominant
    # HBM stream).  TODO(synk): keep A_hat in f32 (or a compensated split) if
    # tighter accuracy than bf16 normalization coefficients is needed.
    adj = normalized_adjacency_padded(edge_index, n, n_pad, dtype=jnp.bfloat16)

    # Layer-1 modalities fused into ONE MXU pass:
    #   [X1|X2] @ [[W1,0],[0,W2]] == [X1@W1 | X2@W2]
    # K = f1_pad+f2_pad fills the 256-deep v6e/v7x MXU; the result is a single
    # lane-dense 2*h_pad-wide store.  Zero padding keeps it exact.
    x_cat = jnp.zeros((n_pad, f1_pad + f2_pad), jnp.bfloat16)
    x_cat = x_cat.at[:n, :f1].set(x_mod1.astype(jnp.bfloat16))
    x_cat = x_cat.at[:n, f1_pad:f1_pad + f2].set(x_mod2.astype(jnp.bfloat16))

    w_bd = jnp.zeros((f1_pad + f2_pad, 2 * h_pad), jnp.bfloat16)
    w_bd = w_bd.at[:f1, :hidden].set(params["w1a"].astype(jnp.bfloat16))
    w_bd = w_bd.at[f1_pad:f1_pad + f2, h_pad:h_pad + hidden].set(
        params["w1b"].astype(jnp.bfloat16))

    b_cat = jnp.zeros((1, 2 * h_pad), jnp.float32)
    b_cat = b_cat.at[:, :hidden].set(params["b1a"])
    b_cat = b_cat.at[:, h_pad:h_pad + hidden].set(params["b1b"])

    # W2 rows placed so that padded-concat @ w2_p == cat(h1, h2) @ w2.
    w2_p = jnp.zeros((2 * h_pad, c_pad), jnp.bfloat16)
    w2_p = w2_p.at[:hidden, :out_channels].set(
        params["w2"][:hidden].astype(jnp.bfloat16))
    w2_p = w2_p.at[h_pad:h_pad + hidden, :out_channels].set(
        params["w2"][hidden:].astype(jnp.bfloat16))
    b2_p = jnp.zeros((1, c_pad), jnp.float32).at[:, :out_channels].set(params["b2"])

    # 1) XW = [X1@W1 | X2@W2]                                (one launch)
    xw_cat = feat_transform(x_cat, w_bd, tm=tm)

    # 2) HW2 = relu(A_hat @ XW + b_cat) @ W2                 (one launch;
    #    layer-2 transform fused into the epilogue, H never hits HBM)
    hw2 = gcn_agg_relu_w2(adj, xw_cat, b_cat, w2_p, tm=tm, tk=tk)

    # 3) out = log_softmax(A_hat @ HW2 + b2) over real class lanes
    z = gcn_agg_logsoftmax(adj, hw2, b2_p, tm=tm, tk=tk, valid_cols=out_channels)
    return z[:n, :out_channels]


def gcnmd_reference(params, x1, x2, edge_index):
    """Pure-JAX f32 reference (PyTorch module semantics) for correctness checks."""
    n = x1.shape[0]
    adj = normalized_adjacency_padded(edge_index, n, n, dtype=jnp.float32)
    h1 = jnp.maximum(adj @ (x1 @ params["w1a"]) + params["b1a"], 0.0)
    h2 = jnp.maximum(adj @ (x2 @ params["w1b"]) + params["b1b"], 0.0)
    h = jnp.concatenate([h1, h2], axis=1)
    z = adj @ (h @ params["w2"]) + params["b2"]
    return jax.nn.log_softmax(z, axis=1)


# ----------------------------------------------------------------------------
# Main
# ----------------------------------------------------------------------------
if __name__ == "__main__":
    key = jax.random.PRNGKey(0)
    k_x1, k_x2, k_p = jax.random.split(key, 3)

    num_nodes = 8
    in_channels_modality1 = 4
    in_channels_modality2 = 6
    hidden = 16
    out_channels = 3

    x_modality1 = jax.random.normal(k_x1, (num_nodes, in_channels_modality1), jnp.float32)
    x_modality2 = jax.random.normal(k_x2, (num_nodes, in_channels_modality2), jnp.float32)

    # Deterministic undirected ring graph (both directions listed).
    src = jnp.arange(num_nodes, dtype=jnp.int32)
    dst = (src + 1) % num_nodes
    edge_index = jnp.stack(
        [jnp.concatenate([src, dst]), jnp.concatenate([dst, src])], axis=0
    )  # (2, 2*num_nodes)

    params = init_params(k_p, in_channels_modality1, in_channels_modality2,
                         hidden, out_channels)

    out = gcnmd_forward(params, x_modality1, x_modality2, edge_index)
    out = jax.block_until_ready(out)

    assert out.shape == (num_nodes, out_channels)
    # rows of log_softmax should exp-sum to 1
    assert jnp.allclose(jnp.sum(jnp.exp(out), axis=1), 1.0, atol=1e-5)
    # match the pure-JAX f32 reference (bf16 MXU operands -> loose tolerance)
    ref = gcnmd_reference(params, x_modality1, x_modality2, edge_index)
    assert jnp.allclose(out, ref, atol=5e-2, rtol=5e-2), (
        float(jnp.max(jnp.abs(out - ref))))
    print("KERNEL_OK")
</pallas_src>

<mosaic_0001>
module attributes {stable_mosaic.version = 11 : i64} {
  func.func @_feat_kernel(%arg0: i32, %arg1: memref<128x256xbf16, #tpu.memory_space<vmem>>, %arg2: memref<256x256xbf16, #tpu.memory_space<vmem>>, %arg3: memref<128x256xbf16, #tpu.memory_space<vmem>>) attributes {dimension_semantics = [#tpu.dimension_semantics<parallel>], iteration_bounds = array<i64: 2>, scalar_prefetch = 0 : i64, scratch_operands = 0 : i64, tpu.core_type = #tpu.core_type<tc>, window_params = [{transform_indices = @transform_0, window_bounds = array<i64: 128, 256>}, {pipeline_mode = #tpu.pipeline_mode<synchronous>, transform_indices = @transform_1, window_bounds = array<i64: 256, 256>}, {transform_indices = @transform_2, window_bounds = array<i64: 128, 256>}]} {
    %c0 = arith.constant 0 : index
    %c0_0 = arith.constant 0 : index
    %0 = vector.load %arg1[%c0, %c0_0] : memref<128x256xbf16, #tpu.memory_space<vmem>>, vector<128x256xbf16>
    %c0_1 = arith.constant 0 : index
    %c0_2 = arith.constant 0 : index
    %1 = vector.load %arg2[%c0_1, %c0_2] : memref<256x256xbf16, #tpu.memory_space<vmem>>, vector<256x256xbf16>
    %cst = arith.constant dense<0.000000e+00> : vector<128x256xf32>
    %2 = tpu.matmul %0, %1, %cst {dimension_numbers = #tpu.dot_dimension_numbers<[1], [0], [0], [1], [0, 0, 1, 1], [], []>} : vector<128x256xbf16>, vector<256x256xbf16>, vector<128x256xf32> -> vector<128x256xf32>
    %3 = arith.truncf %2 : vector<128x256xf32> to vector<128x256xbf16>
    %c0_3 = arith.constant 0 : index
    %c0_4 = arith.constant 0 : index
    %4 = vector.load %arg3[%c0_3, %c0_4] : memref<128x256xbf16, #tpu.memory_space<vmem>>, vector<128x256xbf16>
    tpu.vector_store %arg3[%c0_3, %c0_4], %3 {strides = array<i32>} : memref<128x256xbf16, #tpu.memory_space<vmem>>, vector<128x256xbf16>,
    return
  }
  func.func @transform_0(%arg0: i32) -> (i32, i32) {
    %c0_i32 = arith.constant 0 : i32
    %c0_i32_0 = arith.constant 0 : i32
    return %arg0, %c0_i32 : i32, i32
  }
  func.func @transform_1(%arg0: i32) -> (i32, i32) {
    %c0_i32 = arith.constant 0 : i32
    %c0_i32_0 = arith.constant 0 : i32
    %c0_i32_1 = arith.constant 0 : i32
    return %c0_i32, %c0_i32_0 : i32, i32
  }
  func.func @transform_2(%arg0: i32) -> (i32, i32) {
    %c0_i32 = arith.constant 0 : i32
    %c0_i32_0 = arith.constant 0 : i32
    return %arg0, %c0_i32 : i32, i32
  }
}

</mosaic_0001>

<bundles_post_ra>
// kernel: tpu_custom_call.1
= control target key start
LH: loop header
LB: loop body
LE: loop exit
PB: predicated region body
PF: predicated region fallthrough
CT: control target
= control target key end

     0   :  { %7 = vsyncpa [#allocation3], 0  ;;  %s1428_s0 = inlined_call_operand.hbm [shape: bf16[256,256], index: 0, kind: input, shape index: {}]   ;;  %s1429_s1 = inlined_call_operand.hbm [shape: bf16[256,256], index: 1, kind: input, shape index: {}]   ;;  %s1430_s2 = inlined_call_operand.hbm [shape: bf16[256,256], index: 2, kind: output, shape index: {}]  }
   0x1   :  { %9 = vsyncpa [#allocation3 + $0x1], 0 }
   0x2   :  { %10 = vsyncpa [#allocation6], 0 }
   0x3   :  { %11 = vsyncpa [#allocation4], 0 }
   0x4   :  { %13 = vsyncpa [#allocation4 + $0x1], 0  ;;  %s1204_s9 = smov 0   ;;  %s1206_s10 = smov 0  }
   0x5   :  { %s1208_s11 = smov 0   ;;  %s1210_s12 = smov 0  }
   0x6 LB: > { %s1225_s13 = sadd.s32 4294967295, %s1180_s12   ;;  %s791_s14 = sadd.s32 4294967294, %s1180_s12   ;;  %s1180_s12 = sphi %s1210_s12, %s1452_s12   ;;  %s1176_s11 = sphi %s1208_s11, %s1451_s11   ;;  %s1172_s10 = sphi %s1206_s10, %s1450_s10   ;;  %s1168_s9 = sphi %s1204_s9, %s1449_s9  }
   0x7   : > { %p39_p0 = scmp.ne.s32.totalorder %s1172_s10, %s1168_s9  ;;  %p1431_p1 = scmp.eq.s32.totalorder %s1225_s13, 0 }
   0x8   : > { %p90_p3 = scmp.eq.s32.totalorder %s791_s14, 1  ;;  %p792_p5 = scmp.ge.s32.totalorder %s1180_s12, 1 }
   0x9   : > { %p1234_p4 = por %p1431_p1, %p39_p0  ;;  %p97_p7 = scmp.lt.s32.totalorder %s1180_s12, 3 }
   0xa   : > { %p1239_p6 = por %p90_p3, %p39_p0  ;;  %s1182_s18 = smov [#allocation5]  }
   0xb   : > { %s1435_s15 = scalar_select %p1234_p4, 1, 0 }
   0xc   : > { %s1436_s16 = scalar_select %p1239_p6, 1, 0 }
   0xd   : > { %p1244_p8 = pnand %p792_p5, %p97_p7  ;;  %s109_s19 = sshll.u32 %s1182_s18, 4  ;;  %s110_s19 = int_to_ptr.vmem [resolvable:$true] %s109_s19 }
   0xe   : > { %s1258_s21 = sadd.s32 1, %s1180_s12   ;;  %s26_s22 = sadd.s32 1, %s1176_s11 }
   0xf   : > { %s1437_s17 = scalar_select %p1244_p8, 1, 0 }
  0x10   : > { %p933_p9 = pneg %p1244_p8  ;;  %s23_s23 = ssub.s32 %s1180_s12, %s1258_s21 }
  0x11   : > { %s1069_s24 = scalar_lea.vmem %s110_s19, 4096  ;;  %p1077_p5 = scmp.lt.s32.totalorder %s110_s19, %s110_s19 }
  0x12   : > { %p1253_p11 = pnand %p933_p9, %p1431_p1  ;;  %p1070_p13 = scmp.ne.s32.totalorder %s110_s19, %s1069_s24 }
  0x13   : > { %p1078_p7 = scmp.lt.s32.totalorder %s1069_s24, %s1069_s24 }
  0x14   : > { %p1060_p12 = pneg %p1253_p11 }
  0x15   : > { %p1079_p10 = por %p1078_p7, %p1077_p5 }
  0x16   : > { %p1072_p0 = pnand %p1070_p13, %p1060_p12 }
  0x18   : > { %p1073_p3 = pneg %p1072_p0 }
  0x1a   : > { %p1080_p2 = pnand %p1079_p10, %p1073_p3 }
  0x1c   : > { %1083 = shalt.err (!%p1080_p2)
}
  0x1d   : > { %s1183_s25 = smov 128   ;;  %s1184_s26 = smov 8  }
  0x1e   : > { %936 = dma.hbm_to_vmem [thread:$0]  (!%p1253_p11), %s1429_s1, 4096, %s110_s19, [#allocation6], %s1183_s25, %s1183_s25, %s1184_s26  }
  0x1f   : > { %p24_p2 = scmp.eq.s32.totalorder %s23_s23, 0  ;;  %p33_p9 = scmp.ne.s32.totalorder %s1176_s11, %s1172_s10 }
  0x20   : > { %p34_p10 = scmp.eq.s32.totalorder %s1180_s12, 0  ;;  %p946_p12 = scmp.lt.s32.totalorder %s1180_s12, 2 }
  0x21   : > { %s1278_s29 = scalar_select %p24_p2, %s1176_s11, %s26_s22  }
  0x22   : > { %p35_p13 = por %p34_p10, %p33_p9  ;;  %p1439_p0 = scmp.eq.s32.totalorder %s1225_s13, 1 }
  0x23   : > { %s123_s3 = sand.u32 1, %s1176_s11   ;;  %s874_s4 = sshll.u32 %s1180_s12, 11 }
  0x24   : > { %p1282_p3 = por %p1439_p0, %p33_p9  ;;  %s795_s5 = sshll.u32 %s123_s3, 7 }
  0x25   : > { %s1291_s8 = scalar_lea.hbm %s1428_s0, %s874_s4  ;;  %s127_s14 = scalar_lea.vmem [#allocation2], %s795_s5 }
  0x26   : > { %s1440_s30 = scalar_select %p1282_p3, 1, 0 }
  0x27   : > { %s135_s18 = sshll.u32 %s127_s14, 4  ;;  %p1293_p11 = pnand %p946_p12, %p35_p13  ;;  %s1297_s18 = int_to_ptr.vmem [resolvable:$true] %s135_s18 }
  0x28   : > { %s1299_s20 = scalar_lea.sflag [#allocation3], %s123_s3  ;;  %s1084_s22 = scalar_lea.hbm %s1291_s8, 2048 }
  0x29   : > { %p1085_p5 = scmp.ne.s32.totalorder %s1291_s8, %s1084_s22  ;;  %p1086_p7 = pneg %p1293_p11 }
  0x2a   : > { %s1089_s27 = scalar_lea.hbm %s1428_s0, 4096  ;;  %p1090_p10 = scmp.lt.s32.totalorder %s1291_s8, %s1428_s0 }
  0x2b   : > { %p1087_p2 = pnand %p1086_p7, %p1085_p5  ;;  %p1091_p12 = scmp.lt.s32.totalorder %s1089_s27, %s1084_s22 }
  0x2d   : > { %p1088_p9 = pneg %p1087_p2  ;;  %p1092_p13 = por %p1091_p12, %p1090_p10 }
  0x2f   : > { %p1093_p0 = pnand %p1092_p13, %p1088_p9 }
  0x31   : > { %1096 = shalt.err (!%p1093_p0)
}
  0x32   : > { %s1097_s3 = scalar_lea.vmem %s1297_s18, 2048  ;;  %s1185_s5 = smov [#allocation2]  }
  0x33   : > { %p1098_p1 = scmp.ne.s32.totalorder %s1297_s18, %s1097_s3  ;;  %s1102_s6 = sshll.u32 %s1185_s5, 4  ;;  %s1103_s6 = int_to_ptr.vmem [resolvable:$false] %s1102_s6 }
  0x34   : > { %s1104_s7 = scalar_lea.vmem %s1103_s6, 4096  ;;  %p1105_p2 = scmp.lt.s32.totalorder %s1297_s18, %s1103_s6 }
  0x35   : > { %p1100_p6 = pnand %p1098_p1, %p1086_p7  ;;  %p1106_p3 = scmp.lt.s32.totalorder %s1104_s7, %s1097_s3 }
  0x37   : > { %p1101_p5 = pneg %p1100_p6  ;;  %p1107_p4 = por %p1106_p3, %p1105_p2 }
  0x39   : > { %p1108_p8 = pnand %p1107_p4, %p1101_p5 }
  0x3b   : > { %1111 = shalt.err (!%p1108_p8)
}
  0x3c   : > { %940 = dma.hbm_to_vmem [thread:$0]  (!%p1293_p11), %s1291_s8, 2048, %s1297_s18, %s1299_s20, %s1183_s25, %s1183_s25, %s1184_s26  }
  0x3d   : > { %p1442_p1 = scmp.ne.s32.totalorder %s1437_s17, 0 }
  0x3e   : > { %s1326_s14 = sand.u32 (!%p1442_p1), 1, %s1172_s10   ;;  %p1443_p4 = scmp.ne.s32.totalorder (!%p1442_p1), %s1435_s15, 0 }
  0x3f   : > { %147 = sbr.rel (%p1442_p1) target bundleno = 376 (0x178), region = 28  ;;  %s800_s22 = sshll.u32 (!%p1442_p1), %s1326_s14, 7 }
  0x40   : > { %s150_s23 = scalar_lea.sflag (!%p1442_p1), [#allocation3], %s1326_s14  ;;  %s1332_s19 = scalar_lea.vmem (!%p1442_p1), [#allocation2], %s800_s22 }
  0x44   : > { %1155 = dma.done.wait (%p1443_p4), %s150_s23, 2048  }
  0x45   : > { %1157 = vsyncadd (%p1443_p4), %s150_s23, 4294965248  ;;  %p1444_p6 = scmp.eq.s32.totalorder %s1225_s13, 0 }
  0x47   : > { %1159 = dma.done.wait (%p1444_p6), [#allocation6], 4096   ;;  %p1445_p8 = pmov %p1444_p6 }
  0x48   : > { %v986_v0 = vld [vmem:[#allocation5 + $0x74] ss:$8 sps:$4 sm:$0xff]   ;;  %v988_v1 = vld [vmem:[#allocation5 + $0x70] ss:$8 sps:$4 sm:$0xff]   ;;  %v989_v2 = vld [vmem:[#allocation5 + $0x64] ss:$8 sps:$4 sm:$0xff]  }
  0x49   : > { %1161 = vsyncadd (%p1445_p8), [#allocation6], 4294963200  ;;  %468 = vmatprep.subr.bf16.mxu0 %v986_v0  ;;  %893 = vmatprep.subr.bf16.mxu1 %v986_v0  ;;  %v991_v3 = vld [vmem:[#allocation5 + $0x60] ss:$8 sps:$4 sm:$0xff]   ;;  %v992_v4 = vld [vmem:[#allocation5 + $0x54] ss:$8 sps:$4 sm:$0xff]  }
  0x4a   : > { %469 = vmatpush1.bf16.msra.mxu0 %v988_v1  ;;  %909 = vmatpush1.bf16.msra.mxu1 %v988_v1  ;;  %v994_v5 = vld [vmem:[#allocation5 + $0x50] ss:$8 sps:$4 sm:$0xff]   ;;  %v995_v6 = vld [vmem:[#allocation5 + $0x44] ss:$8 sps:$4 sm:$0xff]   ;;  %v997_v7 = vld [vmem:[#allocation5 + $0x40] ss:$8 sps:$4 sm:$0xff]  }
  0x4b   : > { %470 = vmatprep.subr.bf16.mxu0 %v989_v2  ;;  %894 = vmatprep.subr.bf16.mxu1 %v989_v2  ;;  %v998_v8 = vld [vmem:[#allocation5 + $0x34] ss:$8 sps:$4 sm:$0xff]   ;;  %v1000_v9 = vld [vmem:[#allocation5 + $0x30] ss:$8 sps:$4 sm:$0xff]   ;;  %v1001_v10 = vld [vmem:[#allocation5 + $0x24] ss:$8 sps:$4 sm:$0xff]  }
  0x4c   : > { %v1003_v11 = vld [vmem:[#allocation5 + $0x20] ss:$8 sps:$4 sm:$0xff]   ;;  %v1004_v12 = vld [vmem:[#allocation5 + $0x14] ss:$8 sps:$4 sm:$0xff]   ;;  %v1036_v13 = vld [vmem:[%s1332_s19 + $0x4] ss:$8 sps:$4 sm:$0xff]  }
  0x4d   : > { %v1006_v14 = vld [vmem:[#allocation5 + $0x10] ss:$8 sps:$4 sm:$0xff]   ;;  %v1039_v15 = vld [vmem:[%s1332_s19 + $0x44] ss:$8 sps:$4 sm:$0xff]   ;;  %500 = vmatprep.mubr.bf16.mxu0 %v1036_v13  ;;  %v1009_v17 = vld [vmem:[#allocation5] ss:$8 sps:$4 sm:$0xff]  }
  0x4e   : > { %471 = vmatpush1.bf16.msra.mxu0 %v991_v3  ;;  %910 = vmatpush1.bf16.msra.mxu1 %v991_v3  ;;  %v1007_v16 = vld [vmem:[#allocation5 + $0x4] ss:$8 sps:$4 sm:$0xff]   ;;  %v1010_v18 = vld [vmem:[#allocation5 + $0xf4] ss:$8 sps:$4 sm:$0xff]   ;;  %v1012_v19 = vld [vmem:[#allocation5 + $0xf0] ss:$8 sps:$4 sm:$0xff]  }
  0x4f   : > { %472 = vmatprep.subr.bf16.mxu0 %v992_v4  ;;  %895 = vmatprep.subr.bf16.mxu1 %v992_v4  ;;  %v1013_v20 = vld [vmem:[#allocation5 + $0xe4] ss:$8 sps:$4 sm:$0xff]   ;;  %v1015_v21 = vld [vmem:[#allocation5 + $0xe0] ss:$8 sps:$4 sm:$0xff]   ;;  %v1016_v22 = vld [vmem:[#allocation5 + $0xd4] ss:$8 sps:$4 sm:$0xff]  }
  0x50   : > { %540 = vmatprep.mubr.bf16.mxu1 %v1039_v15  ;;  %v1018_v23 = vld [vmem:[#allocation5 + $0xd0] ss:$8 sps:$4 sm:$0xff]   ;;  %v1019_v24 = vld [vmem:[#allocation5 + $0xc4] ss:$8 sps:$4 sm:$0xff]   ;;  %v1021_v25 = vld [vmem:[#allocation5 + $0xc0] ss:$8 sps:$4 sm:$0xff]  }
  0x51   : > { %v1022_v26 = vld [vmem:[#allocation5 + $0xb4] ss:$8 sps:$4 sm:$0xff]   ;;  %v1024_v27 = vld [vmem:[#allocation5 + $0xb0] ss:$8 sps:$4 sm:$0xff]   ;;  %v1025_v28 = vld [vmem:[#allocation5 + $0xa4] ss:$8 sps:$4 sm:$0xff]  }
  0x52   : > { %473 = vmatpush1.bf16.msra.mxu0 %v994_v5  ;;  %911 = vmatpush1.bf16.msra.mxu1 %v994_v5  ;;  %v1027_v29 = vld [vmem:[#allocation5 + $0xa0] ss:$8 sps:$4 sm:$0xff]   ;;  %v1028_v30 = vld [vmem:[#allocation5 + $0x94] ss:$8 sps:$4 sm:$0xff]   ;;  %v1030_v31 = vld [vmem:[#allocation5 + $0x90] ss:$8 sps:$4 sm:$0xff]  }
  0x53   : > { %474 = vmatprep.subr.bf16.mxu0 %v995_v6  ;;  %896 = vmatprep.subr.bf16.mxu1 %v995_v6  ;;  %v1031_v32 = vld [vmem:[#allocation5 + $0x84] ss:$8 sps:$4 sm:$0xff]   ;;  %v1033_v33 = vld [vmem:[#allocation5 + $0x80] ss:$8 sps:$4 sm:$0xff]   ;;  %v1040_v36 = vld [vmem:[%s1332_s19 + $0x14] ss:$8 sps:$4 sm:$0xff]  }
  0x54   : > { %v1034_v34 = vld [vmem:[%s1332_s19] ss:$8 sps:$4 sm:$0xff]   ;;  %v1042_v37 = vld [vmem:[%s1332_s19 + $0x54] ss:$8 sps:$4 sm:$0xff]   ;;  %v1044_v38 = vld [vmem:[%s1332_s19 + $0x10] ss:$8 sps:$4 sm:$0xff]  }
  0x55   : > { %v1037_v35 = vld [vmem:[%s1332_s19 + $0x40] ss:$8 sps:$4 sm:$0xff]   ;;  %v1045_v39 = vld [vmem:[%s1332_s19 + $0x50] ss:$8 sps:$4 sm:$0xff]   ;;  %v1046_v40 = vld [vmem:[%s1332_s19 + $0x24] ss:$8 sps:$4 sm:$0xff]  }
  0x56   : > { %475 = vmatpush1.bf16.msra.mxu0 %v997_v7  ;;  %912 = vmatpush1.bf16.msra.mxu1 %v997_v7  ;;  %v1048_v41 = vld [vmem:[%s1332_s19 + $0x64] ss:$8 sps:$4 sm:$0xff]   ;;  %v1050_v42 = vld [vmem:[%s1332_s19 + $0x20] ss:$8 sps:$4 sm:$0xff]   ;;  %v1052_v44 = vld [vmem:[%s1332_s19 + $0x34] ss:$8 sps:$4 sm:$0xff]  }
  0x57   : > { %476 = vmatprep.subr.bf16.mxu0 %v998_v8  ;;  %897 = vmatprep.subr.bf16.mxu1 %v998_v8  ;;  %v1051_v43 = vld [vmem:[%s1332_s19 + $0x60] ss:$8 sps:$4 sm:$0xff]   ;;  %v1054_v45 = vld [vmem:[%s1332_s19 + $0x74] ss:$8 sps:$4 sm:$0xff]   ;;  %v1056_v46 = vld [vmem:[%s1332_s19 + $0x30] ss:$8 sps:$4 sm:$0xff]  }
  0x58   : > { %v1057_v47 = vld [vmem:[%s1332_s19 + $0x70] ss:$8 sps:$4 sm:$0xff]   ;;  %s1360_s15 = scalar_lea.vmem [#allocation7], %s800_s22  ;;  %s892_s17 = sshll.u32 %s1225_s13, 11 }
  0x59   : > { %s708_s25 = sshll.u32 %s1360_s15, 4  ;;  %s1381_s18 = scalar_lea.hbm %s1430_s2, %s892_s17  ;;  %s1383_s25 = int_to_ptr.vmem [resolvable:$true] %s708_s25 }
  0x5a   : > { %477 = vmatpush1.bf16.msra.mxu0 %v1000_v9  ;;  %913 = vmatpush1.bf16.msra.mxu1 %v1000_v9  ;;  %s694_s13 = scalar_lea.sflag [#allocation4], %s1326_s14  ;;  %s1112_s20 = scalar_lea.vmem %s1383_s25, 2048 }
  0x5b   : > { %478 = vmatprep.subr.bf16.mxu0 %v1001_v10  ;;  %898 = vmatprep.subr.bf16.mxu1 %v1001_v10  ;;  %p1113_p3 = scmp.ne.s32.totalorder %s1383_s25, %s1112_s20  ;;  %p1446_p11 = scmp.ne.s32.totalorder %s1440_s30, 0 }
  0x5c   : > { %s1186_s24 = smov [#allocation7]  }
  0x5d   : > { %p1114_p7 = pnand %p1113_p3, %p1446_p11  ;;  %s1116_s27 = sshll.u32 %s1186_s24, 4  ;;  %s1117_s27 = int_to_ptr.vmem [resolvable:$false] %s1116_s27 }
  0x5e   : > { %479 = vmatpush1.bf16.msra.mxu0 %v1003_v11  ;;  %914 = vmatpush1.bf16.msra.mxu1 %v1003_v11  ;;  %s1118_s28 = scalar_lea.vmem %s1117_s27, 4096  ;;  %p1119_p10 = scmp.lt.s32.totalorder %s1383_s25, %s1117_s27 }
  0x5f   : > { %480 = vmatprep.subr.bf16.mxu0 %v1004_v12  ;;  %899 = vmatprep.subr.bf16.mxu1 %v1004_v12  ;;  %p1115_p9 = pneg %p1114_p7  ;;  %p1120_p12 = scmp.lt.s32.totalorder %s1118_s28, %s1112_s20 }
  0x61   : > { %p1121_p13 = por %p1120_p12, %p1119_p10 }
  0x62   : > { %481 = vmatpush1.bf16.msra.mxu0 %v1006_v14  ;;  %915 = vmatpush1.bf16.msra.mxu1 %v1006_v14 }
  0x63   : > { %482 = vmatprep.subr.bf16.mxu0 %v1007_v16  ;;  %900 = vmatprep.subr.bf16.mxu1 %v1007_v16  ;;  %p1122_p0 = pnand %p1121_p13, %p1115_p9 }
  0x66   : > { %483 = vmatpush1.bf16.msra.mxu0 %v1009_v17  ;;  %916 = vmatpush1.bf16.msra.mxu1 %v1009_v17 }
  0x67   : > { %484 = vmatprep.subr.bf16.mxu0 %v1010_v18  ;;  %901 = vmatprep.subr.bf16.mxu1 %v1010_v18 }
  0x6a   : > { %485 = vmatpush2.bf16.msra.mxu0 %v1012_v19  ;;  %917 = vmatpush2.bf16.msra.mxu1 %v1012_v19 }
  0x6b   : > { %486 = vmatprep.subr.bf16.mxu0 %v1013_v20  ;;  %902 = vmatprep.subr.bf16.mxu1 %v1013_v20 }
  0x6e   : > { %487 = vmatpush2.bf16.msra.mxu0 %v1015_v21  ;;  %918 = vmatpush2.bf16.msra.mxu1 %v1015_v21 }
  0x6f   : > { %488 = vmatprep.subr.bf16.mxu0 %v1016_v22  ;;  %903 = vmatprep.subr.bf16.mxu1 %v1016_v22 }
  0x72   : > { %489 = vmatpush2.bf16.msra.mxu0 %v1018_v23  ;;  %919 = vmatpush2.bf16.msra.mxu1 %v1018_v23 }
  0x73   : > { %490 = vmatprep.subr.bf16.mxu0 %v1019_v24  ;;  %904 = vmatprep.subr.bf16.mxu1 %v1019_v24 }
  0x76   : > { %491 = vmatpush2.bf16.msra.mxu0 %v1021_v25  ;;  %920 = vmatpush2.bf16.msra.mxu1 %v1021_v25 }
  0x77   : > { %492 = vmatprep.subr.bf16.mxu0 %v1022_v26  ;;  %905 = vmatprep.subr.bf16.mxu1 %v1022_v26 }
  0x7a   : > { %493 = vmatpush2.bf16.msra.mxu0 %v1024_v27  ;;  %921 = vmatpush2.bf16.msra.mxu1 %v1024_v27 }
  0x7b   : > { %494 = vmatprep.subr.bf16.mxu0 %v1025_v28  ;;  %906 = vmatprep.subr.bf16.mxu1 %v1025_v28 }
  0x7e   : > { %495 = vmatpush2.bf16.msra.mxu0 %v1027_v29  ;;  %922 = vmatpush2.bf16.msra.mxu1 %v1027_v29 }
  0x7f   : > { %496 = vmatprep.subr.bf16.mxu0 %v1028_v30  ;;  %907 = vmatprep.subr.bf16.mxu1 %v1028_v30 }
  0x82   : > { %497 = vmatpush2.bf16.msra.mxu0 %v1030_v31  ;;  %923 = vmatpush2.bf16.msra.mxu1 %v1030_v31 }
  0x83   : > { %498 = vmatprep.subr.bf16.mxu0 %v1031_v32  ;;  %908 = vmatprep.subr.bf16.mxu1 %v1031_v32 }
  0x86   : > { %499 = vmatpush2.bf16.msra.mxu0 %v1033_v33  ;;  %924 = vmatpush2.bf16.msra.mxu1 %v1033_v33 }
  0x89   : > { %501 = vmatmul.mubr.bf16.vlgmr.msra.gmra.mxu0 %v1034_v34  ;;  %541 = vmatmul.mubr.bf16.vlgmr.msra.gmra.mxu1 %v1037_v35 }
  0x8a   : > { %510 = vmatprep.mubr.bf16.mxu0 %v1040_v36  ;;  %550 = vmatprep.mubr.bf16.mxu1 %v1042_v37 }
  0x91   : > { %511 = vmatmul.mubr.bf16.gmra.mxu0 %v1044_v38  ;;  %551 = vmatmul.mubr.bf16.gmra.mxu1 %v1045_v39 }
  0x92   : > { %520 = vmatprep.mubr.bf16.mxu0 %v1046_v40  ;;  %560 = vmatprep.mubr.bf16.mxu1 %v1048_v41 }
  0x99   : > { %521 = vmatmul.mubr.bf16.gmra.mxu0 %v1050_v42  ;;  %561 = vmatmul.mubr.bf16.gmra.mxu1 %v1051_v43 }
  0x9a   : > { %530 = vmatprep.mubr.bf16.mxu0 %v1052_v44  ;;  %570 = vmatprep.mubr.bf16.mxu1 %v1054_v45 }
  0xa1   : > { %531 = vmatmul.mubr.bf16.gmra.mxu0 %v1056_v46  ;;  %571 = vmatmul.mubr.bf16.gmra.mxu1 %v1057_v47 }
 0x149   : > { %v502_v48 = vpop.f32.mrf.mxu0  ;;  %v542_v49 = vpop.f32.mrf.mxu1 }
 0x14b   : > { %v504_v50 = vpop.f32.mrf.mxu0  ;;  %v544_v51 = vpop.f32.mrf.mxu1 }
 0x14c   : > { %v875_v52 = vpack.c.bf16 %v504_v50, %v502_v48  ;;  %v883_v53 = vpack.c.bf16 %v544_v51, %v542_v49 }
 0x14d   : > { %v506_v54 = vpop.f32.mrf.mxu0  ;;  %v546_v55 = vpop.f32.mrf.mxu1 }
 0x14e   : > { %677 = vst [vmem:[%s1360_s15] sm:$0xff] %v875_v52  ;;  %685 = vst [vmem:[%s1360_s15 + $0x40] sm:$0xff] %v883_v53 }
 0x14f   : > { %v508_v56 = vpop.f32.mrf.mxu0  ;;  %v548_v57 = vpop.f32.mrf.mxu1 }
 0x150   : > { %v876_v58 = vpack.c.bf16 %v508_v56, %v506_v54  ;;  %v884_v59 = vpack.c.bf16 %v548_v57, %v546_v55 }
 0x151   : > { %v512_v60 = vpop.f32.mrf.mxu0  ;;  %v552_v61 = vpop.f32.mrf.mxu1 }
 0x152   : > { %678 = vst [vmem:[%s1360_s15 + $0x8] sm:$0xff] %v876_v58  ;;  %686 = vst [vmem:[%s1360_s15 + $0x48] sm:$0xff] %v884_v59 }
 0x153   : > { %v514_v62 = vpop.f32.mrf.mxu0  ;;  %v554_v63 = vpop.f32.mrf.mxu1 }
 0x154   : > { %v877_v0 = vpack.c.bf16 %v514_v62, %v512_v60  ;;  %v885_v1 = vpack.c.bf16 %v554_v63, %v552_v61 }
 0x155   : > { %v516_v2 = vpop.f32.mrf.mxu0  ;;  %v556_v3 = vpop.f32.mrf.mxu1 }
 0x156   : > { %679 = vst [vmem:[%s1360_s15 + $0x10] sm:$0xff] %v877_v0  ;;  %687 = vst [vmem:[%s1360_s15 + $0x50] sm:$0xff] %v885_v1 }
 0x157   : > { %v518_v4 = vpop.f32.mrf.mxu0  ;;  %v558_v5 = vpop.f32.mrf.mxu1 }
 0x158   : > { %v878_v6 = vpack.c.bf16 %v518_v4, %v516_v2  ;;  %v886_v7 = vpack.c.bf16 %v558_v5, %v556_v3 }
 0x159   : > { %v522_v8 = vpop.f32.mrf.mxu0  ;;  %v562_v9 = vpop.f32.mrf.mxu1 }
 0x15a   : > { %680 = vst [vmem:[%s1360_s15 + $0x18] sm:$0xff] %v878_v6  ;;  %688 = vst [vmem:[%s1360_s15 + $0x58] sm:$0xff] %v886_v7 }
 0x15b   : > { %v524_v10 = vpop.f32.mrf.mxu0  ;;  %v564_v11 = vpop.f32.mrf.mxu1 }
 0x15c   : > { %v879_v12 = vpack.c.bf16 %v524_v10, %v522_v8  ;;  %v887_v13 = vpack.c.bf16 %v564_v11, %v562_v9 }
 0x15d   : > { %v526_v14 = vpop.f32.mrf.mxu0  ;;  %v566_v15 = vpop.f32.mrf.mxu1 }
 0x15e   : > { %681 = vst [vmem:[%s1360_s15 + $0x20] sm:$0xff] %v879_v12  ;;  %689 = vst [vmem:[%s1360_s15 + $0x60] sm:$0xff] %v887_v13 }
 0x15f   : > { %v528_v16 = vpop.f32.mrf.mxu0  ;;  %v568_v17 = vpop.f32.mrf.mxu1 }
 0x160   : > { %v880_v18 = vpack.c.bf16 %v528_v16, %v526_v14  ;;  %v888_v19 = vpack.c.bf16 %v568_v17, %v566_v15 }
 0x161   : > { %v532_v20 = vpop.f32.mrf.mxu0  ;;  %v572_v21 = vpop.f32.mrf.mxu1 }
 0x162   : > { %682 = vst [vmem:[%s1360_s15 + $0x28] sm:$0xff] %v880_v18  ;;  %690 = vst [vmem:[%s1360_s15 + $0x68] sm:$0xff] %v888_v19 }
 0x163   : > { %v534_v22 = vpop.f32.mrf.mxu0  ;;  %v574_v23 = vpop.f32.mrf.mxu1 }
 0x164   : > { %v881_v24 = vpack.c.bf16 %v534_v22, %v532_v20  ;;  %v889_v25 = vpack.c.bf16 %v574_v23, %v572_v21 }
 0x165   : > { %v536_v26 = vpop.f32.mrf.mxu0  ;;  %v576_v27 = vpop.f32.mrf.mxu1 }
 0x166   : > { %683 = vst [vmem:[%s1360_s15 + $0x30] sm:$0xff] %v881_v24  ;;  %691 = vst [vmem:[%s1360_s15 + $0x70] sm:$0xff] %v889_v25 }
 0x167   : > { %v538_v28 = vpop.f32.mrf.mxu0  ;;  %v578_v29 = vpop.f32.mrf.mxu1 }
 0x168   : > { %v882_v30 = vpack.c.bf16 %v538_v28, %v536_v26  ;;  %v890_v31 = vpack.c.bf16 %v578_v29, %v576_v27 }
 0x16a   : > { %684 = vst [vmem:[%s1360_s15 + $0x38] sm:$0xff] %v882_v30  ;;  %692 = vst [vmem:[%s1360_s15 + $0x78] sm:$0xff] %v890_v31 }
 0x16b   : > { %1125 = shalt.err (!%p1122_p0)
}
 0x16c   : > { %s1126_s4 = scalar_lea.hbm %s1381_s18, 2048  ;;  %s1130_s6 = scalar_lea.hbm %s1430_s2, 4096 }
 0x16d   : > { %p1127_p5 = scmp.ne.s32.totalorder %s1381_s18, %s1126_s4  ;;  %p1131_p4 = scmp.lt.s32.totalorder %s1381_s18, %s1430_s2 }
 0x16e   : > { %p1132_p6 = scmp.lt.s32.totalorder %s1130_s6, %s1126_s4 }
 0x16f   : > { %p1128_p2 = pnand %p1127_p5, %p1446_p11 }
 0x170   : > { %p1133_p8 = por %p1132_p6, %p1131_p4 }
 0x171   : > { %p1129_p1 = pneg %p1128_p2 }
 0x173   : > { %p1134_p3 = pnand %p1133_p8, %p1129_p1 }
 0x175   : > { %1137 = shalt.err (!%p1134_p3)
}
 0x176   : > { %s1187_s23 = smov 128   ;;  %s1188_s19 = smov 8  }
 0x177   : > { %931 = dma.vmem_to_hbm [thread:$0]  (%p1446_p11), %s1383_s25, 2048, %s1381_s18, %s694_s13, %s1187_s23, %s1187_s23, %s1188_s19  }
 0x178 PF: > { %s723_s15 = sand.u32 1, %s1168_s9   ;;  %p1447_p7 = scmp.ne.s32.totalorder %s1436_s16, 0 }
 0x179   : > { %p1448_p9 = scmp.ge.s32.totalorder %s1180_s12, 2  ;;  %s724_s17 = scalar_lea.sflag [#allocation4], %s723_s15 }
 0x17b   : > { %p942_p10 = pnand %p1448_p9, %p1447_p7 }
 0x17d   : > { %p943_p12 = pneg %p942_p10 }
 0x17f   : > { %1163 = dma.done.wait (%p943_p12), %s724_s17, 2048  }
 0x180   : > { %1165 = vsyncadd (%p943_p12), %s724_s17, 4294965248  ;;  %p16_p13 = scmp.ge.s32.totalorder %s1258_s21, 4   ;;  %s1449_s9 = smov %s1172_s10 }
 0x181   : > { %s1450_s10 = smov %s1176_s11  ;;  %s1451_s11 = smov %s1278_s29 }
 0x182   : > { %s1452_s12 = smov %s1258_s21  ;;  %18 = sbr.rel (!%p16_p13) target bundleno = 6 (0x6), region = 77 }
 0x187   :  { %729 = vsyncpa [#allocation3], 1 }
 0x188   :  { %731 = vsyncpa [#allocation3 + $0x1], 1 }
 0x189   :  { %732 = vsyncpa [#allocation6], 1 }
 0x18a   :  { %733 = vsyncpa [#allocation4], 1 }
 0x18b   :  { %735 = vsyncpa [#allocation4 + $0x1], 1 }

</bundles_post_ra>
